<compile_context>
chip_gen: v6e
topology: v6e:2x2x1
jax: 0.10.0
libtpu: 0.0.40
codegen_flags: <defaults>
</compile_context>

<pallas_src>
import functools

import numpy as np
import jax
import jax.numpy as jnp
from jax.experimental import pallas as pl
from jax.experimental.pallas import tpu as pltpu

# ----------------------------- configuration -------------------------------
CONTENT = 16                   # content_size
EMBED_TOTAL = 48               # embed_size passed to __init__
EMBED = EMBED_TOTAL - CONTENT  # style embed size E = 32
NOISE = 16                     # noise_size
NUM_LATENT_FC = 2              # num_latent_fc_layers
NUM_DEC_FC = 2                 # num_dec_fc_layers
DEC_HIDDEN = 64                # dec_hidden_size
BATCH = 8
EPS = 1e-5                     # torch.nn.LayerNorm default eps
D = EMBED + CONTENT            # dec_fc feature size = 48
LANES = 128                    # lane width for the packed slab / output


def _round_up(x, m):
    return (x + m - 1) // m * m


# ------------------------- raw (unpacked) parameters ------------------------
def _init_linear(key, fin, fout):
    """PyTorch-style Linear init; weight stored as (in, out), bias as (1, out)."""
    k1, k2 = jax.random.split(key)
    bound = 1.0 / (fin ** 0.5)
    w = jax.random.uniform(k1, (fin, fout), jnp.float32, -bound, bound)
    b = jax.random.uniform(k2, (1, fout), jnp.float32, -bound, bound)
    return w, b


def _init_ln(dim):
    return jnp.ones((1, dim), jnp.float32), jnp.zeros((1, dim), jnp.float32)


def make_raw_params(key):
    keys = iter(jax.random.split(key, 32))
    p = {}
    # map_noise: Linear(noise, E) + LayerNorm(E)
    p['mn_w'], p['mn_b'] = _init_linear(next(keys), NOISE, EMBED)
    p['mn_g'], p['mn_beta'] = _init_ln(EMBED)
    # interaction block 0: ResBlock(2E -> E) [fc1, fc2, linear shortcut] + LN(E)
    p['i0_w1'], p['i0_b1'] = _init_linear(next(keys), 2 * EMBED, EMBED)
    p['i0_w2'], p['i0_b2'] = _init_linear(next(keys), EMBED, EMBED)
    p['i0_ws'], p['i0_bs'] = _init_linear(next(keys), 2 * EMBED, EMBED)
    p['i0_g'], p['i0_beta'] = _init_ln(EMBED)
    # interaction blocks 1..L-1: ResBlock(E -> E) [identity shortcut] + LN(E)
    for l in range(1, NUM_LATENT_FC):
        p[f'i{l}_w1'], p[f'i{l}_b1'] = _init_linear(next(keys), EMBED, EMBED)
        p[f'i{l}_w2'], p[f'i{l}_b2'] = _init_linear(next(keys), EMBED, EMBED)
        p[f'i{l}_g'], p[f'i{l}_beta'] = _init_ln(EMBED)
    # interaction final Linear(E, E)
    p['fin_w'], p['fin_b'] = _init_linear(next(keys), EMBED, EMBED)
    # dec_fc_layers: NUM_DEC_FC x (ResBlock(D, D) + LN(D))
    for l in range(NUM_DEC_FC):
        p[f'd{l}_w1'], p[f'd{l}_b1'] = _init_linear(next(keys), D, D)
        p[f'd{l}_w2'], p[f'd{l}_b2'] = _init_linear(next(keys), D, D)
        p[f'd{l}_g'], p[f'd{l}_beta'] = _init_ln(D)
    # h_fc: Linear(D, H)
    p['h_w'], p['h_b'] = _init_linear(next(keys), D, DEC_HIDDEN)
    return p


# ------------------------ pack params into one slab --------------------------
def pack_params(raw):
    """Pack every parameter into one (R, 128) f32 slab.

    Each entry starts at an 8-aligned row; weights occupy `in_dim` rows,
    bias/LN rows occupy one row.  Returns (slab, entries) where
    entries[name] = (row, nrows, ncols) — all Python ints (static slices).
    """
    entries = {}
    placed = []
    cursor = 0

    def add(name, arr):
        nonlocal cursor
        arr = np.asarray(arr, np.float32)
        r, c = arr.shape
        entries[name] = (cursor, r, c)
        placed.append((cursor, arr))
        cursor = _round_up(cursor + r, 8)

    # Fuse interaction-block-0 fc1 + linear shortcut (both read the same x):
    # one (2E, 2E) matmul producing [fc1_pre | shortcut] in a single MXU pass.
    w0_fused = np.concatenate([np.asarray(raw['i0_w1']), np.asarray(raw['i0_ws'])], axis=1)
    b0_fused = np.concatenate([np.asarray(raw['i0_b1']), np.asarray(raw['i0_bs'])], axis=1)

    add('mn_w', raw['mn_w']); add('mn_b', raw['mn_b'])
    add('mn_g', raw['mn_g']); add('mn_beta', raw['mn_beta'])
    add('i0_wf', w0_fused);   add('i0_bf', b0_fused)
    add('i0_w2', raw['i0_w2']); add('i0_b2', raw['i0_b2'])
    add('i0_g', raw['i0_g']);   add('i0_beta', raw['i0_beta'])
    for l in range(1, NUM_LATENT_FC):
        for s in ('w1', 'b1', 'w2', 'b2', 'g', 'beta'):
            add(f'i{l}_{s}', raw[f'i{l}_{s}'])
    add('fin_w', raw['fin_w']); add('fin_b', raw['fin_b'])
    for l in range(NUM_DEC_FC):
        for s in ('w1', 'b1', 'w2', 'b2', 'g', 'beta'):
            add(f'd{l}_{s}', raw[f'd{l}_{s}'])
    add('h_w', raw['h_w']); add('h_b', raw['h_b'])

    total = _round_up(cursor, 8)
    slab = np.zeros((total, LANES), np.float32)
    for row, arr in placed:
        r, c = arr.shape
        slab[row:row + r, :c] = arr
    return jnp.asarray(slab), entries


# ------------------------- in-kernel math helpers ----------------------------
def _layernorm(x, g, b):
    mu = jnp.mean(x, axis=-1, keepdims=True)
    xc = x - mu
    var = jnp.mean(xc * xc, axis=-1, keepdims=True)
    return xc * jax.lax.rsqrt(var + EPS) * g + b


def _dot(x, w):
    return jnp.dot(x, w, preferred_element_type=jnp.float32)


# --------------------------------- kernel ------------------------------------
def latent_decoder_kernel(z_ref, content_ref, style_ref, slab_ref, out_ref, *, entries):
    """mode == 'trans', dec_type == 'gru', dec_interaction == 'add'."""

    def p(name):
        row, r, c = entries[name]        # static Python ints -> zero-cost view
        return slab_ref[pl.ds(row, r), pl.ds(0, c)]

    z = z_ref[...]                       # (B, NOISE)
    prev_content = content_ref[...]      # (B, CONTENT)
    prev_style = style_ref[...]          # (B, EMBED)

    # --- map_noise: Linear(noise, E) + LayerNorm(E) ---
    zz = _dot(z, p('mn_w')) + p('mn_b')
    zz = _layernorm(zz, p('mn_g'), p('mn_beta'))

    # --- interaction block 0: ResBlock(2E -> E) with fused fc1|shortcut ---
    x = jnp.concatenate([zz, prev_style], axis=1)             # (B, 2E)
    fused = _dot(x, p('i0_wf')) + p('i0_bf')                   # (B, 2E) = [fc1 | sc]
    h = jnp.maximum(fused[:, :EMBED], 0.0)                     # relu(fc1(x))
    sc = fused[:, EMBED:]                                      # shortcut(x)
    x = _dot(h, p('i0_w2')) + p('i0_b2') + sc
    x = _layernorm(x, p('i0_g'), p('i0_beta'))

    # --- interaction blocks 1..L-1: ResBlock(E -> E), identity shortcut ---
    for l in range(1, NUM_LATENT_FC):
        h = jnp.maximum(_dot(x, p(f'i{l}_w1')) + p(f'i{l}_b1'), 0.0)
        x = _dot(h, p(f'i{l}_w2')) + p(f'i{l}_b2') + x
        x = _layernorm(x, p(f'i{l}_g'), p(f'i{l}_beta'))

    # --- final Linear(E, E); 'add' interaction, no T_layer_norm ---
    style_dis = _dot(x, p('fin_w')) + p('fin_b')
    style_new = style_dis + prev_style                         # (B, E)

    # --- new_code = cat([content, style_new]) -> dec_fc_layers ---
    code = jnp.concatenate([prev_content, style_new], axis=1)  # (B, D)
    for l in range(NUM_DEC_FC):
        h = jnp.maximum(_dot(code, p(f'd{l}_w1')) + p(f'd{l}_b1'), 0.0)
        code = _dot(h, p(f'd{l}_w2')) + p(f'd{l}_b2') + code
        code = _layernorm(code, p(f'd{l}_g'), p(f'd{l}_beta'))

    # --- GRU initial hidden: h0 = tanh(Linear(D, H)(new_code)) ---
    h0 = jnp.tanh(_dot(code, p('h_w')) + p('h_b'))             # (B, H)

    # --- single lane-dense (B, 128) store: [h0 | style_new | zero pad] ---
    pad = jnp.zeros((BATCH, LANES - DEC_HIDDEN - EMBED), jnp.float32)
    out_ref[...] = jnp.concatenate([h0, style_new, pad], axis=1)


# ------------------------------ wrapper call ----------------------------------
def build_forward(entries):
    kernel = functools.partial(latent_decoder_kernel, entries=entries)
    vmem = lambda: pl.BlockSpec(memory_space=pltpu.MemorySpace.VMEM)

    @jax.jit
    def forward(z, embed, slab):
        # Wrapper-side layout plumbing: split embed so both pieces start at lane 0
        # (avoids an in-kernel lane slice at offset 16 -> XLU rotation).
        prev_content = embed[:, :CONTENT]
        prev_style = embed[:, CONTENT:]
        out = pl.pallas_call(
            kernel,
            out_shape=jax.ShapeDtypeStruct((BATCH, LANES), jnp.float32),
            in_specs=[vmem(), vmem(), vmem(), vmem()],
            out_specs=vmem(),
        )(z, prev_content, prev_style, slab)
        h0 = out[:, :DEC_HIDDEN]
        style_new = out[:, DEC_HIDDEN:DEC_HIDDEN + EMBED]
        # torch: h0 = h0.unsqueeze(0)  (glue, done outside the kernel)
        return h0[None], style_new

    return forward


# --------------------------- pure-JAX reference --------------------------------
def reference_forward(z, embed, raw):
    lin = lambda x, w, b: x @ w + b

    def ln(x, g, b):
        mu = jnp.mean(x, -1, keepdims=True)
        xc = x - mu
        var = jnp.mean(xc * xc, -1, keepdims=True)
        return xc * jax.lax.rsqrt(var + EPS) * g + b

    prev_content = embed[:, :CONTENT]
    prev_style = embed[:, CONTENT:]

    zz = ln(lin(z, raw['mn_w'], raw['mn_b']), raw['mn_g'], raw['mn_beta'])
    x = jnp.concatenate([zz, prev_style], axis=1)
    h = jnp.maximum(lin(x, raw['i0_w1'], raw['i0_b1']), 0.0)
    x = lin(h, raw['i0_w2'], raw['i0_b2']) + lin(x, raw['i0_ws'], raw['i0_bs'])
    x = ln(x, raw['i0_g'], raw['i0_beta'])
    for l in range(1, NUM_LATENT_FC):
        h = jnp.maximum(lin(x, raw[f'i{l}_w1'], raw[f'i{l}_b1']), 0.0)
        x = lin(h, raw[f'i{l}_w2'], raw[f'i{l}_b2']) + x
        x = ln(x, raw[f'i{l}_g'], raw[f'i{l}_beta'])
    style_dis = lin(x, raw['fin_w'], raw['fin_b'])
    style_new = style_dis + prev_style
    code = jnp.concatenate([prev_content, style_new], axis=1)
    for l in range(NUM_DEC_FC):
        h = jnp.maximum(lin(code, raw[f'd{l}_w1'], raw[f'd{l}_b1']), 0.0)
        code = lin(h, raw[f'd{l}_w2'], raw[f'd{l}_b2']) + code
        code = ln(code, raw[f'd{l}_g'], raw[f'd{l}_beta'])
    h0 = jnp.tanh(lin(code, raw['h_w'], raw['h_b']))
    return h0[None], style_new


# ----------------------------------- main --------------------------------------
if __name__ == "__main__":
    key = jax.random.PRNGKey(0)
    k_z, k_e, k_p = jax.random.split(key, 3)

    z = jax.random.normal(k_z, (BATCH, NOISE), jnp.float32)
    embed = jax.random.normal(k_e, (BATCH, EMBED_TOTAL), jnp.float32)

    raw = make_raw_params(k_p)
    slab, entries = pack_params(raw)
    forward = build_forward(entries)

    h0, style_new = forward(z, embed, slab)
    h0 = jax.block_until_ready(h0)
    style_new = jax.block_until_ready(style_new)

    # sanity check vs. pure-JAX reference (uses the raw, un-fused params)
    h0_ref, style_ref = reference_forward(z, embed, raw)
    assert h0.shape == (1, BATCH, DEC_HIDDEN)
    assert style_new.shape == (BATCH, EMBED)
    assert jnp.allclose(h0, h0_ref, atol=1e-4, rtol=1e-4)
    assert jnp.allclose(style_new, style_ref, atol=1e-4, rtol=1e-4)

    print("KERNEL_OK")
</pallas_src>

<mosaic_0001>
module attributes {stable_mosaic.version = 11 : i64} {
  func.func @latent_decoder_kernel(%arg0: memref<8x16xf32, #tpu.memory_space<vmem>>, %arg1: memref<8x16xf32, #tpu.memory_space<vmem>>, %arg2: memref<8x32xf32, #tpu.memory_space<vmem>>, %arg3: memref<616x128xf32, #tpu.memory_space<vmem>>, %arg4: memref<8x128xf32, #tpu.memory_space<vmem>>) attributes {dimension_semantics = [], scalar_prefetch = 0 : i64, scratch_operands = 0 : i64, tpu.core_type = #tpu.core_type<tc>} {
    %c0 = arith.constant 0 : index
    %c0_0 = arith.constant 0 : index
    %0 = vector.load %arg0[%c0, %c0_0] : memref<8x16xf32, #tpu.memory_space<vmem>>, vector<8x16xf32>
    %c0_1 = arith.constant 0 : index
    %c0_2 = arith.constant 0 : index
    %1 = vector.load %arg1[%c0_1, %c0_2] : memref<8x16xf32, #tpu.memory_space<vmem>>, vector<8x16xf32>
    %c0_3 = arith.constant 0 : index
    %c0_4 = arith.constant 0 : index
    %2 = vector.load %arg2[%c0_3, %c0_4] : memref<8x32xf32, #tpu.memory_space<vmem>>, vector<8x32xf32>
    %c0_5 = arith.constant 0 : index
    %c0_6 = arith.constant 0 : index
    %3 = vector.load %arg3[%c0_5, %c0_6] : memref<616x128xf32, #tpu.memory_space<vmem>>, vector<16x32xf32>
    %cst = arith.constant dense<0.000000e+00> : vector<8x32xf32>
    %4 = tpu.matmul %0, %3, %cst {dimension_numbers = #tpu.dot_dimension_numbers<[1], [0], [0], [1], [0, 0, 1, 1], [], []>} : vector<8x16xf32>, vector<16x32xf32>, vector<8x32xf32> -> vector<8x32xf32>
    %c16 = arith.constant 16 : index
    %c0_7 = arith.constant 0 : index
    %5 = vector.load %arg3[%c16, %c0_7] : memref<616x128xf32, #tpu.memory_space<vmem>>, vector<1x32xf32>
    %6 = vector.broadcast %5 : vector<1x32xf32> to vector<8x32xf32>
    %7 = arith.addf %4, %6 : vector<8x32xf32>
    %c24 = arith.constant 24 : index
    %c0_8 = arith.constant 0 : index
    %8 = vector.load %arg3[%c24, %c0_8] : memref<616x128xf32, #tpu.memory_space<vmem>>, vector<1x32xf32>
    %c32 = arith.constant 32 : index
    %c0_9 = arith.constant 0 : index
    %9 = vector.load %arg3[%c32, %c0_9] : memref<616x128xf32, #tpu.memory_space<vmem>>, vector<1x32xf32>
    %cst_10 = arith.constant dense<0.000000e+00> : vector<8xf32>
    %10 = vector.multi_reduction <add>, %7, %cst_10 [1] : vector<8x32xf32> to vector<8xf32>
    %11 = vector.shape_cast %10 : vector<8xf32> to vector<8x1xf32>
    %cst_11 = arith.constant 3.200000e+01 : f32
    %12 = vector.broadcast %cst_11 : f32 to vector<8x1xf32>
    %13 = arith.divf %11, %12 : vector<8x1xf32>
    %14 = vector.broadcast %13 : vector<8x1xf32> to vector<8x32xf32>
    %15 = arith.subf %7, %14 : vector<8x32xf32>
    %16 = arith.mulf %15, %15 : vector<8x32xf32>
    %cst_12 = arith.constant dense<0.000000e+00> : vector<8xf32>
    %17 = vector.multi_reduction <add>, %16, %cst_12 [1] : vector<8x32xf32> to vector<8xf32>
    %18 = vector.shape_cast %17 : vector<8xf32> to vector<8x1xf32>
    %cst_13 = arith.constant 3.200000e+01 : f32
    %19 = vector.broadcast %cst_13 : f32 to vector<8x1xf32>
    %20 = arith.divf %18, %19 : vector<8x1xf32>
    %cst_14 = arith.constant 9.99999974E-6 : f32
    %21 = vector.broadcast %cst_14 : f32 to vector<8x1xf32>
    %22 = arith.addf %20, %21 : vector<8x1xf32>
    %23 = math.rsqrt %22 : vector<8x1xf32>
    %24 = vector.broadcast %23 : vector<8x1xf32> to vector<8x32xf32>
    %25 = arith.mulf %15, %24 : vector<8x32xf32>
    %26 = vector.broadcast %8 : vector<1x32xf32> to vector<8x32xf32>
    %27 = arith.mulf %25, %26 : vector<8x32xf32>
    %28 = vector.broadcast %9 : vector<1x32xf32> to vector<8x32xf32>
    %29 = arith.addf %27, %28 : vector<8x32xf32>
    %30 = tpu.concatenate %29, %2 in 1 : vector<8x32xf32>, vector<8x32xf32> -> vector<8x64xf32>
    %c40 = arith.constant 40 : index
    %c0_15 = arith.constant 0 : index
    %31 = vector.load %arg3[%c40, %c0_15] : memref<616x128xf32, #tpu.memory_space<vmem>>, vector<64x64xf32>
    %cst_16 = arith.constant dense<0.000000e+00> : vector<8x64xf32>
    %32 = tpu.matmul %30, %31, %cst_16 {dimension_numbers = #tpu.dot_dimension_numbers<[1], [0], [0], [1], [0, 0, 1, 1], [], []>} : vector<8x64xf32>, vector<64x64xf32>, vector<8x64xf32> -> vector<8x64xf32>
    %c104 = arith.constant 104 : index
    %c0_17 = arith.constant 0 : index
    %33 = vector.load %arg3[%c104, %c0_17] : memref<616x128xf32, #tpu.memory_space<vmem>>, vector<1x64xf32>
    %34 = vector.broadcast %33 : vector<1x64xf32> to vector<8x64xf32>
    %35 = arith.addf %32, %34 : vector<8x64xf32>
    %36 = vector.extract_strided_slice %35 {offsets = [0, 0], sizes = [8, 32], strides = [1, 1]} : vector<8x64xf32> to vector<8x32xf32>
    %cst_18 = arith.constant 0.000000e+00 : f32
    %37 = vector.broadcast %cst_18 : f32 to vector<8x32xf32>
    %38 = arith.maximumf %36, %37 : vector<8x32xf32>
    %39 = vector.extract_strided_slice %35 {offsets = [0, 32], sizes = [8, 32], strides = [1, 1]} : vector<8x64xf32> to vector<8x32xf32>
    %c112 = arith.constant 112 : index
    %c0_19 = arith.constant 0 : index
    %40 = vector.load %arg3[%c112, %c0_19] : memref<616x128xf32, #tpu.memory_space<vmem>>, vector<32x32xf32>
    %cst_20 = arith.constant dense<0.000000e+00> : vector<8x32xf32>
    %41 = tpu.matmul %38, %40, %cst_20 {dimension_numbers = #tpu.dot_dimension_numbers<[1], [0], [0], [1], [0, 0, 1, 1], [], []>} : vector<8x32xf32>, vector<32x32xf32>, vector<8x32xf32> -> vector<8x32xf32>
    %c144 = arith.constant 144 : index
    %c0_21 = arith.constant 0 : index
    %42 = vector.load %arg3[%c144, %c0_21] : memref<616x128xf32, #tpu.memory_space<vmem>>, vector<1x32xf32>
    %43 = vector.broadcast %42 : vector<1x32xf32> to vector<8x32xf32>
    %44 = arith.addf %41, %43 : vector<8x32xf32>
    %45 = arith.addf %44, %39 : vector<8x32xf32>
    %c152 = arith.constant 152 : index
    %c0_22 = arith.constant 0 : index
    %46 = vector.load %arg3[%c152, %c0_22] : memref<616x128xf32, #tpu.memory_space<vmem>>, vector<1x32xf32>
    %c160 = arith.constant 160 : index
    %c0_23 = arith.constant 0 : index
    %47 = vector.load %arg3[%c160, %c0_23] : memref<616x128xf32, #tpu.memory_space<vmem>>, vector<1x32xf32>
    %cst_24 = arith.constant dense<0.000000e+00> : vector<8xf32>
    %48 = vector.multi_reduction <add>, %45, %cst_24 [1] : vector<8x32xf32> to vector<8xf32>
    %49 = vector.shape_cast %48 : vector<8xf32> to vector<8x1xf32>
    %cst_25 = arith.constant 3.200000e+01 : f32
    %50 = vector.broadcast %cst_25 : f32 to vector<8x1xf32>
    %51 = arith.divf %49, %50 : vector<8x1xf32>
    %52 = vector.broadcast %51 : vector<8x1xf32> to vector<8x32xf32>
    %53 = arith.subf %45, %52 : vector<8x32xf32>
    %54 = arith.mulf %53, %53 : vector<8x32xf32>
    %cst_26 = arith.constant dense<0.000000e+00> : vector<8xf32>
    %55 = vector.multi_reduction <add>, %54, %cst_26 [1] : vector<8x32xf32> to vector<8xf32>
    %56 = vector.shape_cast %55 : vector<8xf32> to vector<8x1xf32>
    %cst_27 = arith.constant 3.200000e+01 : f32
    %57 = vector.broadcast %cst_27 : f32 to vector<8x1xf32>
    %58 = arith.divf %56, %57 : vector<8x1xf32>
    %cst_28 = arith.constant 9.99999974E-6 : f32
    %59 = vector.broadcast %cst_28 : f32 to vector<8x1xf32>
    %60 = arith.addf %58, %59 : vector<8x1xf32>
    %61 = math.rsqrt %60 : vector<8x1xf32>
    %62 = vector.broadcast %61 : vector<8x1xf32> to vector<8x32xf32>
    %63 = arith.mulf %53, %62 : vector<8x32xf32>
    %64 = vector.broadcast %46 : vector<1x32xf32> to vector<8x32xf32>
    %65 = arith.mulf %63, %64 : vector<8x32xf32>
    %66 = vector.broadcast %47 : vector<1x32xf32> to vector<8x32xf32>
    %67 = arith.addf %65, %66 : vector<8x32xf32>
    %c168 = arith.constant 168 : index
    %c0_29 = arith.constant 0 : index
    %68 = vector.load %arg3[%c168, %c0_29] : memref<616x128xf32, #tpu.memory_space<vmem>>, vector<32x32xf32>
    %cst_30 = arith.constant dense<0.000000e+00> : vector<8x32xf32>
    %69 = tpu.matmul %67, %68, %cst_30 {dimension_numbers = #tpu.dot_dimension_numbers<[1], [0], [0], [1], [0, 0, 1, 1], [], []>} : vector<8x32xf32>, vector<32x32xf32>, vector<8x32xf32> -> vector<8x32xf32>
    %c200 = arith.constant 200 : index
    %c0_31 = arith.constant 0 : index
    %70 = vector.load %arg3[%c200, %c0_31] : memref<616x128xf32, #tpu.memory_space<vmem>>, vector<1x32xf32>
    %71 = vector.broadcast %70 : vector<1x32xf32> to vector<8x32xf32>
    %72 = arith.addf %69, %71 : vector<8x32xf32>
    %cst_32 = arith.constant 0.000000e+00 : f32
    %73 = vector.broadcast %cst_32 : f32 to vector<8x32xf32>
    %74 = arith.maximumf %72, %73 : vector<8x32xf32>
    %c208 = arith.constant 208 : index
    %c0_33 = arith.constant 0 : index
    %75 = vector.load %arg3[%c208, %c0_33] : memref<616x128xf32, #tpu.memory_space<vmem>>, vector<32x32xf32>
    %cst_34 = arith.constant dense<0.000000e+00> : vector<8x32xf32>
    %76 = tpu.matmul %74, %75, %cst_34 {dimension_numbers = #tpu.dot_dimension_numbers<[1], [0], [0], [1], [0, 0, 1, 1], [], []>} : vector<8x32xf32>, vector<32x32xf32>, vector<8x32xf32> -> vector<8x32xf32>
    %c240 = arith.constant 240 : index
    %c0_35 = arith.constant 0 : index
    %77 = vector.load %arg3[%c240, %c0_35] : memref<616x128xf32, #tpu.memory_space<vmem>>, vector<1x32xf32>
    %78 = vector.broadcast %77 : vector<1x32xf32> to vector<8x32xf32>
    %79 = arith.addf %76, %78 : vector<8x32xf32>
    %80 = arith.addf %79, %67 : vector<8x32xf32>
    %c248 = arith.constant 248 : index
    %c0_36 = arith.constant 0 : index
    %81 = vector.load %arg3[%c248, %c0_36] : memref<616x128xf32, #tpu.memory_space<vmem>>, vector<1x32xf32>
    %c256 = arith.constant 256 : index
    %c0_37 = arith.constant 0 : index
    %82 = vector.load %arg3[%c256, %c0_37] : memref<616x128xf32, #tpu.memory_space<vmem>>, vector<1x32xf32>
    %cst_38 = arith.constant dense<0.000000e+00> : vector<8xf32>
    %83 = vector.multi_reduction <add>, %80, %cst_38 [1] : vector<8x32xf32> to vector<8xf32>
    %84 = vector.shape_cast %83 : vector<8xf32> to vector<8x1xf32>
    %cst_39 = arith.constant 3.200000e+01 : f32
    %85 = vector.broadcast %cst_39 : f32 to vector<8x1xf32>
    %86 = arith.divf %84, %85 : vector<8x1xf32>
    %87 = vector.broadcast %86 : vector<8x1xf32> to vector<8x32xf32>
    %88 = arith.subf %80, %87 : vector<8x32xf32>
    %89 = arith.mulf %88, %88 : vector<8x32xf32>
    %cst_40 = arith.constant dense<0.000000e+00> : vector<8xf32>
    %90 = vector.multi_reduction <add>, %89, %cst_40 [1] : vector<8x32xf32> to vector<8xf32>
    %91 = vector.shape_cast %90 : vector<8xf32> to vector<8x1xf32>
    %cst_41 = arith.constant 3.200000e+01 : f32
    %92 = vector.broadcast %cst_41 : f32 to vector<8x1xf32>
    %93 = arith.divf %91, %92 : vector<8x1xf32>
    %cst_42 = arith.constant 9.99999974E-6 : f32
    %94 = vector.broadcast %cst_42 : f32 to vector<8x1xf32>
    %95 = arith.addf %93, %94 : vector<8x1xf32>
    %96 = math.rsqrt %95 : vector<8x1xf32>
    %97 = vector.broadcast %96 : vector<8x1xf32> to vector<8x32xf32>
    %98 = arith.mulf %88, %97 : vector<8x32xf32>
    %99 = vector.broadcast %81 : vector<1x32xf32> to vector<8x32xf32>
    %100 = arith.mulf %98, %99 : vector<8x32xf32>
    %101 = vector.broadcast %82 : vector<1x32xf32> to vector<8x32xf32>
    %102 = arith.addf %100, %101 : vector<8x32xf32>
    %c264 = arith.constant 264 : index
    %c0_43 = arith.constant 0 : index
    %103 = vector.load %arg3[%c264, %c0_43] : memref<616x128xf32, #tpu.memory_space<vmem>>, vector<32x32xf32>
    %cst_44 = arith.constant dense<0.000000e+00> : vector<8x32xf32>
    %104 = tpu.matmul %102, %103, %cst_44 {dimension_numbers = #tpu.dot_dimension_numbers<[1], [0], [0], [1], [0, 0, 1, 1], [], []>} : vector<8x32xf32>, vector<32x32xf32>, vector<8x32xf32> -> vector<8x32xf32>
    %c296 = arith.constant 296 : index
    %c0_45 = arith.constant 0 : index
    %105 = vector.load %arg3[%c296, %c0_45] : memref<616x128xf32, #tpu.memory_space<vmem>>, vector<1x32xf32>
    %106 = vector.broadcast %105 : vector<1x32xf32> to vector<8x32xf32>
    %107 = arith.addf %104, %106 : vector<8x32xf32>
    %108 = arith.addf %107, %2 : vector<8x32xf32>
    %109 = tpu.concatenate %1, %108 in 1 : vector<8x16xf32>, vector<8x32xf32> -> vector<8x48xf32>
    %c304 = arith.constant 304 : index
    %c0_46 = arith.constant 0 : index
    %110 = vector.load %arg3[%c304, %c0_46] : memref<616x128xf32, #tpu.memory_space<vmem>>, vector<48x48xf32>
    %cst_47 = arith.constant dense<0.000000e+00> : vector<8x48xf32>
    %111 = tpu.matmul %109, %110, %cst_47 {dimension_numbers = #tpu.dot_dimension_numbers<[1], [0], [0], [1], [0, 0, 1, 1], [], []>} : vector<8x48xf32>, vector<48x48xf32>, vector<8x48xf32> -> vector<8x48xf32>
    %c352 = arith.constant 352 : index
    %c0_48 = arith.constant 0 : index
    %112 = vector.load %arg3[%c352, %c0_48] : memref<616x128xf32, #tpu.memory_space<vmem>>, vector<1x48xf32>
    %113 = vector.broadcast %112 : vector<1x48xf32> to vector<8x48xf32>
    %114 = arith.addf %111, %113 : vector<8x48xf32>
    %cst_49 = arith.constant 0.000000e+00 : f32
    %115 = vector.broadcast %cst_49 : f32 to vector<8x48xf32>
    %116 = arith.maximumf %114, %115 : vector<8x48xf32>
    %c360 = arith.constant 360 : index
    %c0_50 = arith.constant 0 : index
    %117 = vector.load %arg3[%c360, %c0_50] : memref<616x128xf32, #tpu.memory_space<vmem>>, vector<48x48xf32>
    %cst_51 = arith.constant dense<0.000000e+00> : vector<8x48xf32>
    %118 = tpu.matmul %116, %117, %cst_51 {dimension_numbers = #tpu.dot_dimension_numbers<[1], [0], [0], [1], [0, 0, 1, 1], [], []>} : vector<8x48xf32>, vector<48x48xf32>, vector<8x48xf32> -> vector<8x48xf32>
    %c408 = arith.constant 408 : index
    %c0_52 = arith.constant 0 : index
    %119 = vector.load %arg3[%c408, %c0_52] : memref<616x128xf32, #tpu.memory_space<vmem>>, vector<1x48xf32>
    %120 = vector.broadcast %119 : vector<1x48xf32> to vector<8x48xf32>
    %121 = arith.addf %118, %120 : vector<8x48xf32>
    %122 = arith.addf %121, %109 : vector<8x48xf32>
    %c416 = arith.constant 416 : index
    %c0_53 = arith.constant 0 : index
    %123 = vector.load %arg3[%c416, %c0_53] : memref<616x128xf32, #tpu.memory_space<vmem>>, vector<1x48xf32>
    %c424 = arith.constant 424 : index
    %c0_54 = arith.constant 0 : index
    %124 = vector.load %arg3[%c424, %c0_54] : memref<616x128xf32, #tpu.memory_space<vmem>>, vector<1x48xf32>
    %cst_55 = arith.constant dense<0.000000e+00> : vector<8xf32>
    %125 = vector.multi_reduction <add>, %122, %cst_55 [1] : vector<8x48xf32> to vector<8xf32>
    %126 = vector.shape_cast %125 : vector<8xf32> to vector<8x1xf32>
    %cst_56 = arith.constant 4.800000e+01 : f32
    %127 = vector.broadcast %cst_56 : f32 to vector<8x1xf32>
    %128 = arith.divf %126, %127 : vector<8x1xf32>
    %129 = vector.broadcast %128 : vector<8x1xf32> to vector<8x48xf32>
    %130 = arith.subf %122, %129 : vector<8x48xf32>
    %131 = arith.mulf %130, %130 : vector<8x48xf32>
    %cst_57 = arith.constant dense<0.000000e+00> : vector<8xf32>
    %132 = vector.multi_reduction <add>, %131, %cst_57 [1] : vector<8x48xf32> to vector<8xf32>
    %133 = vector.shape_cast %132 : vector<8xf32> to vector<8x1xf32>
    %cst_58 = arith.constant 4.800000e+01 : f32
    %134 = vector.broadcast %cst_58 : f32 to vector<8x1xf32>
    %135 = arith.divf %133, %134 : vector<8x1xf32>
    %cst_59 = arith.constant 9.99999974E-6 : f32
    %136 = vector.broadcast %cst_59 : f32 to vector<8x1xf32>
    %137 = arith.addf %135, %136 : vector<8x1xf32>
    %138 = math.rsqrt %137 : vector<8x1xf32>
    %139 = vector.broadcast %138 : vector<8x1xf32> to vector<8x48xf32>
    %140 = arith.mulf %130, %139 : vector<8x48xf32>
    %141 = vector.broadcast %123 : vector<1x48xf32> to vector<8x48xf32>
    %142 = arith.mulf %140, %141 : vector<8x48xf32>
    %143 = vector.broadcast %124 : vector<1x48xf32> to vector<8x48xf32>
    %144 = arith.addf %142, %143 : vector<8x48xf32>
    %c432 = arith.constant 432 : index
    %c0_60 = arith.constant 0 : index
    %145 = vector.load %arg3[%c432, %c0_60] : memref<616x128xf32, #tpu.memory_space<vmem>>, vector<48x48xf32>
    %cst_61 = arith.constant dense<0.000000e+00> : vector<8x48xf32>
    %146 = tpu.matmul %144, %145, %cst_61 {dimension_numbers = #tpu.dot_dimension_numbers<[1], [0], [0], [1], [0, 0, 1, 1], [], []>} : vector<8x48xf32>, vector<48x48xf32>, vector<8x48xf32> -> vector<8x48xf32>
    %c480 = arith.constant 480 : index
    %c0_62 = arith.constant 0 : index
    %147 = vector.load %arg3[%c480, %c0_62] : memref<616x128xf32, #tpu.memory_space<vmem>>, vector<1x48xf32>
    %148 = vector.broadcast %147 : vector<1x48xf32> to vector<8x48xf32>
    %149 = arith.addf %146, %148 : vector<8x48xf32>
    %cst_63 = arith.constant 0.000000e+00 : f32
    %150 = vector.broadcast %cst_63 : f32 to vector<8x48xf32>
    %151 = arith.maximumf %149, %150 : vector<8x48xf32>
    %c488 = arith.constant 488 : index
    %c0_64 = arith.constant 0 : index
    %152 = vector.load %arg3[%c488, %c0_64] : memref<616x128xf32, #tpu.memory_space<vmem>>, vector<48x48xf32>
    %cst_65 = arith.constant dense<0.000000e+00> : vector<8x48xf32>
    %153 = tpu.matmul %151, %152, %cst_65 {dimension_numbers = #tpu.dot_dimension_numbers<[1], [0], [0], [1], [0, 0, 1, 1], [], []>} : vector<8x48xf32>, vector<48x48xf32>, vector<8x48xf32> -> vector<8x48xf32>
    %c536 = arith.constant 536 : index
    %c0_66 = arith.constant 0 : index
    %154 = vector.load %arg3[%c536, %c0_66] : memref<616x128xf32, #tpu.memory_space<vmem>>, vector<1x48xf32>
    %155 = vector.broadcast %154 : vector<1x48xf32> to vector<8x48xf32>
    %156 = arith.addf %153, %155 : vector<8x48xf32>
    %157 = arith.addf %156, %144 : vector<8x48xf32>
    %c544 = arith.constant 544 : index
    %c0_67 = arith.constant 0 : index
    %158 = vector.load %arg3[%c544, %c0_67] : memref<616x128xf32, #tpu.memory_space<vmem>>, vector<1x48xf32>
    %c552 = arith.constant 552 : index
    %c0_68 = arith.constant 0 : index
    %159 = vector.load %arg3[%c552, %c0_68] : memref<616x128xf32, #tpu.memory_space<vmem>>, vector<1x48xf32>
    %cst_69 = arith.constant dense<0.000000e+00> : vector<8xf32>
    %160 = vector.multi_reduction <add>, %157, %cst_69 [1] : vector<8x48xf32> to vector<8xf32>
    %161 = vector.shape_cast %160 : vector<8xf32> to vector<8x1xf32>
    %cst_70 = arith.constant 4.800000e+01 : f32
    %162 = vector.broadcast %cst_70 : f32 to vector<8x1xf32>
    %163 = arith.divf %161, %162 : vector<8x1xf32>
    %164 = vector.broadcast %163 : vector<8x1xf32> to vector<8x48xf32>
    %165 = arith.subf %157, %164 : vector<8x48xf32>
    %166 = arith.mulf %165, %165 : vector<8x48xf32>
    %cst_71 = arith.constant dense<0.000000e+00> : vector<8xf32>
    %167 = vector.multi_reduction <add>, %166, %cst_71 [1] : vector<8x48xf32> to vector<8xf32>
    %168 = vector.shape_cast %167 : vector<8xf32> to vector<8x1xf32>
    %cst_72 = arith.constant 4.800000e+01 : f32
    %169 = vector.broadcast %cst_72 : f32 to vector<8x1xf32>
    %170 = arith.divf %168, %169 : vector<8x1xf32>
    %cst_73 = arith.constant 9.99999974E-6 : f32
    %171 = vector.broadcast %cst_73 : f32 to vector<8x1xf32>
    %172 = arith.addf %170, %171 : vector<8x1xf32>
    %173 = math.rsqrt %172 : vector<8x1xf32>
    %174 = vector.broadcast %173 : vector<8x1xf32> to vector<8x48xf32>
    %175 = arith.mulf %165, %174 : vector<8x48xf32>
    %176 = vector.broadcast %158 : vector<1x48xf32> to vector<8x48xf32>
    %177 = arith.mulf %175, %176 : vector<8x48xf32>
    %178 = vector.broadcast %159 : vector<1x48xf32> to vector<8x48xf32>
    %179 = arith.addf %177, %178 : vector<8x48xf32>
    %c560 = arith.constant 560 : index
    %c0_74 = arith.constant 0 : index
    %180 = vector.load %arg3[%c560, %c0_74] : memref<616x128xf32, #tpu.memory_space<vmem>>, vector<48x64xf32>
    %cst_75 = arith.constant dense<0.000000e+00> : vector<8x64xf32>
    %181 = tpu.matmul %179, %180, %cst_75 {dimension_numbers = #tpu.dot_dimension_numbers<[1], [0], [0], [1], [0, 0, 1, 1], [], []>} : vector<8x48xf32>, vector<48x64xf32>, vector<8x64xf32> -> vector<8x64xf32>
    %c608 = arith.constant 608 : index
    %c0_76 = arith.constant 0 : index
    %182 = vector.load %arg3[%c608, %c0_76] : memref<616x128xf32, #tpu.memory_space<vmem>>, vector<1x64xf32>
    %183 = vector.broadcast %182 : vector<1x64xf32> to vector<8x64xf32>
    %184 = arith.addf %181, %183 : vector<8x64xf32>
    %185 = math.tanh %184 : vector<8x64xf32>
    %cst_77 = arith.constant 0.000000e+00 : f32
    %186 = vector.broadcast %cst_77 : f32 to vector<8x32xf32>
    %187 = tpu.concatenate %185, %108, %186 in 1 : vector<8x64xf32>, vector<8x32xf32>, vector<8x32xf32> -> vector<8x128xf32>
    %c0_78 = arith.constant 0 : index
    %c0_79 = arith.constant 0 : index
    %188 = vector.load %arg4[%c0_78, %c0_79] : memref<8x128xf32, #tpu.memory_space<vmem>>, vector<8x128xf32>
    tpu.vector_store %arg4[%c0_78, %c0_79], %187 {strides = array<i32>} : memref<8x128xf32, #tpu.memory_space<vmem>>, vector<8x128xf32>,
    return
  }
}

</mosaic_0001>

<bundles_post_ra>
// kernel: forward.1
= control target key start
LH: loop header
LB: loop body
LE: loop exit
PB: predicated region body
PF: predicated region fallthrough
CT: control target
= control target key end

     0   :  { %9 = vsyncpa [#allocation3], 0  ;;  %s1402_s15 = smov [#allocation2]   ;;  %s1561_s0 = inlined_call_operand.vmem [shape: f32[8,16], index: 0, kind: input, shape index: {}]   ;;  %s1562_s1 = inlined_call_operand.vmem [shape: f32[8,16], index: 1, kind: input, shape index: {}]   ;;  %s1563_s2 = inlined_call_operand.vmem [shape: f32[8,32], index: 2, kind: input, shape index: {}]   ;;  %s1564_s3 = inlined_call_operand.hbm [shape: f32[616,128], index: 3, kind: input, shape index: {}]   ;;  %s1565_s4 = inlined_call_operand.vmem [shape: f32[8,128], index: 4, kind: output, shape index: {}]  }
   0x1   :  { %s21_s16 = sshll.u32 %s1402_s15, 4  ;;  %s22_s16 = int_to_ptr.vmem [resolvable:$true] %s21_s16 }
   0x2   :  { %s1388_s17 = scalar_lea.vmem %s22_s16, 9856  ;;  %p1393_p1 = scmp.lt.s32.totalorder %s22_s16, %s22_s16 }
   0x3   :  { %p1389_p0 = scmp.ne.s32.totalorder %s22_s16, %s1388_s17  ;;  %p1394_p2 = scmp.lt.s32.totalorder %s1388_s17, %s1388_s17 }
   0x5   :  { %p1395_p3 = por %p1394_p2, %p1393_p1 }
   0x7   :  { %p1396_p4 = pnand %p1395_p3, %p1389_p0 }
   0x9   :  { %1399 = shalt.err (!%p1396_p4)
}
   0xa   :  { %s1403_s18 = smov 128   ;;  %s1404_s19 = smov 8  }
   0xb   :  { %27 = dma.hbm_to_vmem [thread:$0]  %s1564_s3, 9856, %s22_s16, [#allocation3], %s1403_s18, %s1403_s18, %s1404_s19  }
   0xc   :  { %1400 = dma.done.wait [#allocation3], 9856  }
   0xd   :  { %1401 = vsyncadd [#allocation3], 4294957440  ;;  %v1405_v0 = vmov 0.0   ;;  %vm1406_vm0 = vmmov 0   ;;  %v35_v1 = vld [vmem:[#allocation2 + $0x8] sm:$0xff]  ;;  %v34_v2 = vld [vmem:[#allocation2] sm:$0xff] }
   0xe   :  { %1214 = vmatprep.subr.mxu0 %v1405_v0  ;;  %1218 = vmatprep.mubr.msk.f32.mxu0 %vm1406_vm0, %v1405_v0  ;;  %v31_v3 = vld [vmem:[%s1561_s0] sm:$0xff]  ;;  %vm41_vm1 = vcmask 130048   ;;  %v1115_v4 = vld [vmem:[#allocation2 + $0x10] ss:$0 sm:$0xff]  ;;  %vm117_vm2 = vcmask 261120   ;;  %s1407_s24 = smov 32  }
   0xf   :  { %1221 = vmatprep.subr.mxu1 %v1405_v0  ;;  %1237 = vmatprep.mubr.msk.f32.mxu1 %vm1406_vm0, %v1405_v0  ;;  %v1457_v9 = vld [vmem:[%s1563_s2] sm:$0xff]  ;;  %v153_v16 = vld [vmem:[#allocation2 + $0x58] sm:$0xff]  ;;  %v152_v17 = vld [vmem:[#allocation2 + $0x50] sm:$0xff]  ;;  %vm160_vm3 = vcmask 523264   ;;  %s1408_s2 = smov 96   ;;  %s1409_s25 = smov 16  }
  0x10   :  { %1215 = vmatpush3.msra.mxu0 %v35_v1  ;;  %143 = vrot.lane.b32.xlu1 %v1457_v9, %s1407_s24  ;;  %v154_v15 = vld [vmem:[#allocation2 + $0x60] sm:$0xff]  ;;  %v151_v18 = vld [vmem:[#allocation2 + $0x48] sm:$0xff]  ;;  %v149_v20 = vld [vmem:[#allocation2 + $0x38] sm:$0xff]  ;;  %vm637_vm4 = vcmask 392192   ;;  %vm1107_vm5 = vcmask 785408  }
  0x11   :  { %1216 = vmatprep.subr.mxu0 %v1405_v0  ;;  %1222 = vmatpush3.msra.mxu1 %v154_v15  ;;  %v150_v19 = vld [vmem:[#allocation2 + $0x40] sm:$0xff]  ;;  %v148_v21 = vld [vmem:[#allocation2 + $0x30] sm:$0xff]  ;;  %v147_v22 = vld [vmem:[#allocation2 + $0x28] sm:$0xff] }
  0x12   :  { %1217 = vmatpush3.msra.mxu0 %v34_v2  ;;  %1223 = vmatprep.subr.mxu1 %v1405_v0  ;;  %v238_v23 = vld [vmem:[#allocation2 + $0x88] sm:$0xff]  ;;  %v1117_v28 = vld [vmem:[#allocation2 + $0x18] ss:$0 sm:$0xff]  ;;  %v1118_v30 = vld [vmem:[#allocation2 + $0x20] ss:$0 sm:$0xff] }
  0x13   :  { %1219 = vmatmul.mubr.msk.f32.vlgmr.msra.gmra.mxu0 %vm41_vm1, %v31_v3  ;;  %1240 = vmatprep.subr.mxu0 %v1405_v0  ;;  %v237_v35 = vld [vmem:[#allocation2 + $0x80] sm:$0xff]  ;;  %v236_v36 = vld [vmem:[#allocation2 + $0x78] sm:$0xff]  ;;  %v235_v37 = vld [vmem:[#allocation2 + $0x70] sm:$0xff] }
  0x14   :  { %1248 = vmatprep.mubr.msk.f32.mxu0 %vm1406_vm0, %v1405_v0  ;;  %1224 = vmatpush3.msra.mxu1 %v153_v16  ;;  %v1119_v38 = vld [vmem:[#allocation2 + $0x68] ss:$0 sm:$0xff]  ;;  %v1121_v43 = vld [vmem:[#allocation2 + $0x90] ss:$0 sm:$0xff]  ;;  %v350_v55 = vld [vmem:[#allocation2 + $0xc0] sm:$0xff] }
  0x15   :  { %1225 = vmatprep.subr.mxu1 %v1405_v0  ;;  %1241 = vmatpush3.msra.mxu0 %v238_v23  ;;  %v349_v56 = vld [vmem:[#allocation2 + $0xb8] sm:$0xff]  ;;  %v348_v57 = vld [vmem:[#allocation2 + $0xb0] sm:$0xff]  ;;  %v347_v58 = vld [vmem:[#allocation2 + $0xa8] sm:$0xff] }
  0x16   :  { %1226 = vmatpush3.msra.mxu1 %v152_v17  ;;  %1242 = vmatprep.subr.mxu0 %v1405_v0  ;;  %v433_v59 = vld [vmem:[#allocation2 + $0xe8] sm:$0xff]  ;;  %v1123_v1 = vld [vmem:[#allocation2 + $0x98] ss:$0 sm:$0xff]  ;;  %v1124_v3 = vld [vmem:[#allocation2 + $0xa0] ss:$0 sm:$0xff] }
  0x17   :  { %1227 = vmatprep.subr.mxu1 %v1405_v0  ;;  %1243 = vmatpush3.msra.mxu0 %v237_v35  ;;  %v1127_v15 = vld [vmem:[#allocation2 + $0xf0] ss:$0 sm:$0xff] }
  0x18   :  { %1228 = vmatpush3.msra.mxu1 %v151_v18  ;;  %1244 = vmatprep.subr.mxu0 %v1405_v0 }
  0x19   :  { %1229 = vmatprep.subr.mxu1 %v1405_v0  ;;  %1245 = vmatpush3.msra.mxu0 %v236_v36  ;;  %v1130_v36 = vld [vmem:[#allocation2 + $0x100] ss:$0 sm:$0xff] }
  0x1a   :  { %1230 = vmatpush3.msra.mxu1 %v150_v19  ;;  %1246 = vmatprep.subr.mxu0 %v1405_v0 }
  0x1b   :  { %1231 = vmatprep.subr.mxu1 %v1405_v0  ;;  %1247 = vmatpush3.msra.mxu0 %v235_v37 }
  0x1c   :  { %1232 = vmatpush3.msra.mxu1 %v149_v20  ;;  %1251 = vmatprep.subr.mxu0 %v1405_v0 }
  0x1d   :  { %1233 = vmatprep.subr.mxu1 %v1405_v0 }
  0x1e   :  { %1234 = vmatpush3.msra.mxu1 %v148_v21 }
  0x1f   :  { %1235 = vmatprep.subr.mxu1 %v1405_v0 }
  0x20   :  { %1236 = vmatpush3.msra.mxu1 %v147_v22 }
  0x21   :  { %1262 = vmatprep.subr.mxu1 %v1405_v0 }
  0x82   :  { %v144_v32 = vpop.permute.xlu1 %143 }
  0xd3   :  { %v111_v5 = vpop.f32.mrf.mxu0 }
  0xd4   :  { %v112_v6 = vadd.f32 %v1115_v4, %v111_v5 }
  0xd5   :  { %v1220_v7 = vpop.f32.mrf.mxu0 }
  0xd6   :  { %v118_v8 = vsel %vm117_vm2, %v112_v6, 0.0  ;;  %v431_v7 = vld [vmem:[#allocation2 + $0xd8] sm:$0xff] }
  0xd7   :  { %119 = vadd.xlane.f32.xlu0 %v118_v8  ;;  %v430_v8 = vld [vmem:[#allocation2 + $0xd0] sm:$0xff] }
 0x160   :  { %v120_v10 = vpop.xlane.xlu0 %119 }
 0x161   :  { %v122_v11 = vmul.f32 0.03125, %v120_v10  ;;  %v1125_v10 = vld [vmem:[#allocation2 + $0xc8] ss:$0 sm:$0xff] }
 0x163   :  { %v123_v12 = vsub.f32 %v112_v6, %v122_v11  ;;  %v432_v6 = vld [vmem:[#allocation2 + $0xe0] sm:$0xff] }
 0x165   :  { %v124_v13 = vmul.f32 %v123_v12, %v123_v12 }
 0x167   :  { %v125_v14 = vsel %vm117_vm2, %v124_v13, 0.0 }
 0x168   :  { %126 = vadd.xlane.f32.xlu0 %v125_v14 }
 0x1f1   :  { %v127_v24 = vpop.xlane.xlu0 %126 }
 0x1f2   :  { %v128_v25 = vmul.f32 0.03125, %v127_v24 }
 0x1f4   :  { %v129_v26 = vadd.f32 1e-05, %v128_v25 }
 0x1f6   :  { %1368 = vrsqrt.f32 %v129_v26  ;;  %v541_v26 = vld [vmem:[#allocation2 + $0x120] sm:$0xff] }
 0x203   :  { %v1369_v27 = vpop.eup %1368 }
 0x204   :  { %v131_v29 = vmul.f32 %v1369_v27, %v123_v12  ;;  %v540_v27 = vld [vmem:[#allocation2 + $0x118] sm:$0xff] }
 0x206   :  { %v136_v31 = vmul.f32 %v1117_v28, %v131_v29  ;;  %v539_v28 = vld [vmem:[#allocation2 + $0x110] sm:$0xff]  ;;  %v538_v29 = vld [vmem:[#allocation2 + $0x108] sm:$0xff] }
 0x208   :  { %v141_v33 = vadd.f32 %v1118_v30, %v136_v31 }
 0x20a   :  { %v146_v34 = vsel %vm117_vm2, %v141_v33, %v144_v32 }
 0x20b   :  { %1238 = vmatmul.mubr.msk.f32.vlgmr.msra.gmra.mxu1 %vm160_vm3, %v146_v34  ;;  %v1129_v34 = vld [vmem:[#allocation2 + $0xf8] ss:$0 sm:$0xff] }
 0x20c   :  { %1270 = vmatprep.mubr.msk.f32.mxu1 %vm1406_vm0, %v1405_v0  ;;  %1263 = vmatpush3.msra.mxu1 %v433_v59 }
 0x20d   :  { %1264 = vmatprep.subr.mxu1 %v1405_v0 }
 0x20e   :  { %1265 = vmatpush3.msra.mxu1 %v432_v6 }
 0x20f   :  { %1266 = vmatprep.subr.mxu1 %v1405_v0 }
 0x210   :  { %1267 = vmatpush3.msra.mxu1 %v431_v7 }
 0x211   :  { %1268 = vmatprep.subr.mxu1 %v1405_v0 }
 0x212   :  { %1269 = vmatpush3.msra.mxu1 %v430_v8 }
 0x213   :  { %1284 = vmatprep.subr.mxu1 %v1405_v0 }
 0x2cb   :  { %v230_v39 = vpop.f32.mrf.mxu1 }
 0x2cc   :  { %v231_v40 = vadd.f32 %v1119_v38, %v230_v39  ;;  %v631_v39 = vld [vmem:[#allocation2 + $0x158] sm:$0xff] }
 0x2cd   :  { %v1239_v41 = vpop.f32.mrf.mxu1 }
 0x2ce   :  { %v234_v42 = vmax.f32 %v231_v40, 0.0  ;;  %318 = vrot.lane.b32.xlu1 %v231_v40, %s1408_s2  ;;  %v630_v40 = vld [vmem:[#allocation2 + $0x150] sm:$0xff]  ;;  %v629_v41 = vld [vmem:[#allocation2 + $0x148] sm:$0xff] }
 0x2d0   :  { %1249 = vmatmul.mubr.msk.f32.vlgmr.msra.gmra.mxu0 %vm117_vm2, %v234_v42  ;;  %v628_v42 = vld [vmem:[#allocation2 + $0x140] sm:$0xff] }
 0x2d1   :  { %1259 = vmatprep.mubr.msk.f32.mxu0 %vm1406_vm0, %v1405_v0  ;;  %1252 = vmatpush3.msra.mxu0 %v350_v55 }
 0x2d2   :  { %1253 = vmatprep.subr.mxu0 %v1405_v0 }
 0x2d3   :  { %1254 = vmatpush3.msra.mxu0 %v349_v56  ;;  %v714_v56 = vld [vmem:[#allocation2 + $0x178] sm:$0xff] }
 0x2d4   :  { %1255 = vmatprep.subr.mxu0 %v1405_v0 }
 0x2d5   :  { %1256 = vmatpush3.msra.mxu0 %v348_v57  ;;  %v712_v57 = vld [vmem:[#allocation2 + $0x168] sm:$0xff] }
 0x2d6   :  { %1257 = vmatprep.subr.mxu0 %v1405_v0 }
 0x2d7   :  { %1258 = vmatpush3.msra.mxu0 %v347_v58  ;;  %v1133_v58 = vld [vmem:[#allocation2 + $0x160] ss:$0 sm:$0xff] }
 0x2d8   :  { %1273 = vmatprep.subr.mxu0 %v1405_v0 }
 0x340   :  { %v319_v46 = vpop.permute.xlu1 %318 }
 0x390   :  { %v313_v44 = vpop.f32.mrf.mxu0 }
 0x391   :  { %v314_v45 = vadd.f32 %v1121_v43, %v313_v44  ;;  %v627_v43 = vld [vmem:[#allocation2 + $0x138] sm:$0xff]  ;;  %v626_v44 = vld [vmem:[#allocation2 + $0x130] sm:$0xff] }
 0x392   :  { %v1250_v47 = vpop.f32.mrf.mxu0 }
 0x393   :  { %v321_v48 = vadd.f32 %v319_v46, %v314_v45  ;;  %v717_v45 = vld [vmem:[#allocation2 + $0x190] sm:$0xff]  ;;  %v716_v46 = vld [vmem:[#allocation2 + $0x188] sm:$0xff]  ;;  %v715_v47 = vld [vmem:[#allocation2 + $0x180] sm:$0xff] }
 0x395   :  { %v324_v49 = vsel %vm117_vm2, %v321_v48, 0.0 }
 0x396   :  { %325 = vadd.xlane.f32.xlu0 %v324_v49 }
 0x41f   :  { %v326_v50 = vpop.xlane.xlu0 %325 }
 0x420   :  { %v327_v51 = vmul.f32 0.03125, %v326_v50 }
 0x422   :  { %v328_v52 = vsub.f32 %v321_v48, %v327_v51  ;;  %v1131_v48 = vld [vmem:[#allocation2 + $0x128] ss:$0 sm:$0xff] }
 0x424   :  { %v329_v53 = vmul.f32 %v328_v52, %v328_v52 }
 0x426   :  { %v330_v54 = vsel %vm117_vm2, %v329_v53, 0.0  ;;  %v32_v53 = vld [vmem:[%s1562_s1] sm:$0xff]  ;;  %s1410_s1 = smov 64  }
 0x427   :  { %331 = vadd.xlane.f32.xlu1 %v330_v54 }
 0x4b0   :  { %v332_v60 = vpop.xlane.xlu1 %331 }
 0x4b1   :  { %v333_v61 = vmul.f32 0.03125, %v332_v60 }
 0x4b3   :  { %v334_v62 = vadd.f32 1e-05, %v333_v61 }
 0x4b5   :  { %1370 = vrsqrt.f32 %v334_v62 }
 0x4c2   :  { %v1371_v63 = vpop.eup %1370 }
 0x4c3   :  { %v336_v2 = vmul.f32 %v1371_v63, %v328_v52  ;;  %v1135_v63 = vld [vmem:[#allocation2 + $0x198] ss:$0 sm:$0xff] }
 0x4c5   :  { %v341_v4 = vmul.f32 %v1123_v1, %v336_v2 }
 0x4c7   :  { %v346_v5 = vadd.f32 %v1124_v3, %v341_v4 }
 0x4c9   :  { %1260 = vmatmul.mubr.msk.f32.vlgmr.msra.gmra.mxu0 %vm117_vm2, %v346_v5 }
 0x4ca   :  { %1281 = vmatprep.mubr.msk.f32.mxu0 %vm1406_vm0, %v1405_v0  ;;  %1274 = vmatpush3.msra.mxu0 %v541_v26 }
 0x4cb   :  { %1275 = vmatprep.subr.mxu0 %v1405_v0 }
 0x4cc   :  { %1276 = vmatpush3.msra.mxu0 %v540_v27  ;;  %v1138_v27 = vld [vmem:[#allocation2 + $0x1a8] ss:$0 sm:$0xff] }
 0x4cd   :  { %1277 = vmatprep.subr.mxu0 %v1405_v0 }
 0x4ce   :  { %1278 = vmatpush3.msra.mxu0 %v539_v28 }
 0x4cf   :  { %1279 = vmatprep.subr.mxu0 %v1405_v0 }
 0x4d0   :  { %1280 = vmatpush3.msra.mxu0 %v538_v29 }
 0x4d1   :  { %1299 = vmatprep.subr.mxu0 %v1405_v0 }
 0x589   :  { %v425_v11 = vpop.f32.mrf.mxu0 }
 0x58a   :  { %v426_v12 = vadd.f32 %v1125_v10, %v425_v11 }
 0x58b   :  { %v1261_v13 = vpop.f32.mrf.mxu0 }
 0x58c   :  { %v429_v14 = vmax.f32 %v426_v12, 0.0  ;;  %v828_v12 = vld [vmem:[#allocation2 + $0x1d8] sm:$0xff]  ;;  %v827_v13 = vld [vmem:[#allocation2 + $0x1d0] sm:$0xff] }
 0x58e   :  { %1271 = vmatmul.mubr.msk.f32.vlgmr.msra.gmra.mxu1 %vm117_vm2, %v429_v14  ;;  %v826_v14 = vld [vmem:[#allocation2 + $0x1c8] sm:$0xff] }
 0x58f   :  { %1296 = vmatprep.mubr.msk.f32.mxu1 %vm1406_vm0, %v1405_v0  ;;  %1285 = vmatpush3.msra.mxu1 %v631_v39 }
 0x590   :  { %1286 = vmatprep.subr.mxu1 %v1405_v0 }
 0x591   :  { %1287 = vmatpush3.msra.mxu1 %v630_v40 }
 0x592   :  { %1288 = vmatprep.subr.mxu1 %v1405_v0 }
 0x593   :  { %1289 = vmatpush3.msra.mxu1 %v629_v41 }
 0x594   :  { %1290 = vmatprep.subr.mxu1 %v1405_v0 }
 0x595   :  { %1291 = vmatpush3.msra.mxu1 %v628_v42 }
 0x596   :  { %1292 = vmatprep.subr.mxu1 %v1405_v0 }
 0x597   :  { %1293 = vmatpush3.msra.mxu1 %v627_v43 }
 0x598   :  { %1294 = vmatprep.subr.mxu1 %v1405_v0 }
 0x599   :  { %1295 = vmatpush3.msra.mxu1 %v626_v44 }
 0x59a   :  { %1314 = vmatprep.subr.mxu1 %v1405_v0 }
 0x64e   :  { %v508_v16 = vpop.f32.mrf.mxu1 }
 0x64f   :  { %v509_v17 = vadd.f32 %v1127_v15, %v508_v16  ;;  %v825_v15 = vld [vmem:[#allocation2 + $0x1c0] sm:$0xff]  ;;  %v824_v16 = vld [vmem:[#allocation2 + $0x1b8] sm:$0xff] }
 0x650   :  { %v1272_v18 = vpop.f32.mrf.mxu1 }
 0x651   :  { %v512_v19 = vadd.f32 %v509_v17, %v346_v5  ;;  %v823_v17 = vld [vmem:[#allocation2 + $0x1b0] sm:$0xff] }
 0x652   :  { %v913_v18 = vld [vmem:[#allocation2 + $0x210] sm:$0xff] }
 0x653   :  { %v515_v20 = vsel %vm117_vm2, %v512_v19, 0.0 }
 0x654   :  { %516 = vadd.xlane.f32.xlu0 %v515_v20  ;;  %v911_v20 = vld [vmem:[#allocation2 + $0x200] sm:$0xff] }
 0x6dd   :  { %v517_v21 = vpop.xlane.xlu0 %516 }
 0x6de   :  { %v518_v22 = vmul.f32 0.03125, %v517_v21 }
 0x6e0   :  { %v519_v23 = vsub.f32 %v512_v19, %v518_v22  ;;  %v912_v19 = vld [vmem:[#allocation2 + $0x208] sm:$0xff] }
 0x6e2   :  { %v520_v24 = vmul.f32 %v519_v23, %v519_v23 }
 0x6e4   :  { %v521_v25 = vsel %vm117_vm2, %v520_v24, 0.0 }
 0x6e5   :  { %522 = vadd.xlane.f32.xlu0 %v521_v25  ;;  %v1137_v25 = vld [vmem:[#allocation2 + $0x1a0] ss:$0 sm:$0xff] }
 0x76e   :  { %v523_v30 = vpop.xlane.xlu0 %522 }
 0x76f   :  { %v524_v31 = vmul.f32 0.03125, %v523_v30  ;;  %v910_v30 = vld [vmem:[#allocation2 + $0x1f8] sm:$0xff] }
 0x771   :  { %v525_v32 = vadd.f32 1e-05, %v524_v31  ;;  %v909_v31 = vld [vmem:[#allocation2 + $0x1f0] sm:$0xff] }
 0x773   :  { %1372 = vrsqrt.f32 %v525_v32  ;;  %v908_v32 = vld [vmem:[#allocation2 + $0x1e8] sm:$0xff] }
 0x780   :  { %v1373_v33 = vpop.eup %1372 }
 0x781   :  { %v527_v35 = vmul.f32 %v1373_v33, %v519_v23  ;;  %v1139_v33 = vld [vmem:[#allocation2 + $0x1e0] ss:$0 sm:$0xff] }
 0x783   :  { %v532_v37 = vmul.f32 %v1129_v34, %v527_v35 }
 0x785   :  { %v537_v38 = vadd.f32 %v1130_v36, %v532_v37 }
 0x787   :  { %1282 = vmatmul.mubr.msk.f32.vlgmr.msra.gmra.mxu0 %vm117_vm2, %v537_v38  ;;  %v1141_v38 = vld [vmem:[#allocation2 + $0x218] ss:$0 sm:$0xff] }
 0x788   :  { %1311 = vmatprep.mubr.msk.f32.mxu0 %vm1406_vm0, %v1405_v0  ;;  %1300 = vmatpush3.msra.mxu0 %v717_v45 }
 0x789   :  { %1301 = vmatprep.subr.mxu0 %v1405_v0 }
 0x78a   :  { %1302 = vmatpush3.msra.mxu0 %v716_v46 }
 0x78b   :  { %1303 = vmatprep.subr.mxu0 %v1405_v0 }
 0x78c   :  { %1304 = vmatpush3.msra.mxu0 %v715_v47 }
 0x78d   :  { %1305 = vmatprep.subr.mxu0 %v1405_v0 }
 0x78e   :  { %1306 = vmatpush3.msra.mxu0 %v714_v56 }
 0x78f   :  { %1307 = vmatprep.subr.mxu0 %v1405_v0 }
 0x847   :  { %v616_v49 = vpop.f32.mrf.mxu0 }
 0x848   :  { %v617_v50 = vadd.f32 %v1131_v48, %v616_v49  ;;  %v1023_v49 = vld [vmem:[#allocation2 + $0x258] sm:$0xff] }
 0x849   :  { %v1283_v51 = vpop.f32.mrf.mxu0 }
 0x84a   :  { %v1515_v52 = vadd.f32 %v617_v50, %v1457_v9  ;;  %v713_v9 = vld [vmem:[#allocation2 + $0x170] sm:$0xff]  ;;  %v1021_v51 = vld [vmem:[#allocation2 + $0x248] sm:$0xff] }
 0x84b   :  { %1308 = vmatpush3.msra.mxu0 %v713_v9  ;;  %v1022_v50 = vld [vmem:[#allocation2 + $0x250] sm:$0xff] }
 0x84c   :  { %622 = vrot.lane.b32.xlu0 %v1515_v52, %s1409_s25  ;;  %1309 = vmatprep.subr.mxu0 %v1405_v0 }
 0x84d   :  { %1310 = vmatpush3.msra.mxu0 %v712_v57 }
 0x84e   :  { %1329 = vmatprep.subr.mxu0 %v1405_v0 }
 0x8be   :  { %v623_v54 = vpop.permute.xlu0 %622 }
 0x8bf   :  { %v625_v55 = vsel %vm41_vm1, %v32_v53, %v623_v54  ;;  %v1020_v53 = vld [vmem:[#allocation2 + $0x240] sm:$0xff]  ;;  %v1019_v54 = vld [vmem:[#allocation2 + $0x238] sm:$0xff] }
 0x8c0   :  { %1297 = vmatmul.mubr.msk.f32.vlgmr.msra.gmra.mxu1 %vm637_vm4, %v625_v55 }
 0x8c1   :  { %1326 = vmatprep.mubr.msk.f32.mxu1 %vm1406_vm0, %v1405_v0  ;;  %1315 = vmatpush3.msra.mxu1 %v828_v12 }
 0x8c2   :  { %1316 = vmatprep.subr.mxu1 %v1405_v0 }
 0x8c3   :  { %1317 = vmatpush3.msra.mxu1 %v827_v13 }
 0x8c4   :  { %1318 = vmatprep.subr.mxu1 %v1405_v0 }
 0x8c5   :  { %1319 = vmatpush3.msra.mxu1 %v826_v14 }
 0x8c6   :  { %1320 = vmatprep.subr.mxu1 %v1405_v0 }
 0x8c7   :  { %1321 = vmatpush3.msra.mxu1 %v825_v15 }
 0x8c8   :  { %1322 = vmatprep.subr.mxu1 %v1405_v0 }
 0x8c9   :  { %1323 = vmatpush3.msra.mxu1 %v824_v16 }
 0x8ca   :  { %1324 = vmatprep.subr.mxu1 %v1405_v0 }
 0x8cb   :  { %1325 = vmatpush3.msra.mxu1 %v823_v17 }
 0x8cc   :  { %1344 = vmatprep.subr.mxu1 %v1405_v0 }
 0x980   :  { %v707_v59 = vpop.f32.mrf.mxu1 }
 0x981   :  { %v708_v60 = vadd.f32 %v1133_v58, %v707_v59  ;;  %v1143_v58 = vld [vmem:[#allocation2 + $0x220] ss:$0 sm:$0xff] }
 0x982   :  { %v1298_v61 = vpop.f32.mrf.mxu1 }
 0x983   :  { %v711_v62 = vmax.f32 %v708_v60, 0.0  ;;  %v1144_v60 = vld [vmem:[#allocation2 + $0x228] ss:$0 sm:$0xff] }
 0x985   :  { %1312 = vmatmul.mubr.msk.f32.vlgmr.msra.gmra.mxu0 %vm637_vm4, %v711_v62 }
 0x986   :  { %1341 = vmatprep.mubr.msk.f32.mxu0 %vm1406_vm0, %v1405_v0  ;;  %1330 = vmatpush3.msra.mxu0 %v913_v18 }
 0x987   :  { %1331 = vmatprep.subr.mxu0 %v1405_v0 }
 0x988   :  { %1332 = vmatpush3.msra.mxu0 %v912_v19 }
 0x989   :  { %1333 = vmatprep.subr.mxu0 %v1405_v0 }
 0x98a   :  { %1334 = vmatpush3.msra.mxu0 %v911_v20 }
 0x98b   :  { %1335 = vmatprep.subr.mxu0 %v1405_v0 }
 0x98c   :  { %1336 = vmatpush3.msra.mxu0 %v910_v30 }
 0x98d   :  { %1337 = vmatprep.subr.mxu0 %v1405_v0 }
 0x98e   :  { %1338 = vmatpush3.msra.mxu0 %v909_v31 }
 0x98f   :  { %1339 = vmatprep.subr.mxu0 %v1405_v0 }
 0x990   :  { %1340 = vmatpush3.msra.mxu0 %v908_v32 }
 0xa45   :  { %v792_v1 = vpop.f32.mrf.mxu0 }
 0xa46   :  { %v793_v2 = vadd.f32 %v1135_v63, %v792_v1  ;;  %v1145_v63 = vld [vmem:[#allocation2 + $0x260] ss:$0 sm:$0xff] }
 0xa47   :  { %v1313_v3 = vpop.f32.mrf.mxu0 }
 0xa48   :  { %v796_v4 = vadd.f32 %v793_v2, %v625_v55  ;;  %v1018_v55 = vld [vmem:[#allocation2 + $0x230] sm:$0xff] }
 0xa4a   :  { %v799_v5 = vsel %vm637_vm4, %v796_v4, 0.0 }
 0xa4b   :  { %800 = vadd.xlane.f32.xlu0 %v799_v5 }
 0xad4   :  { %v801_v6 = vpop.xlane.xlu0 %800 }
 0xad5   :  { %v803_v7 = vmul.f32 0.020833334, %v801_v6 }
 0xad7   :  { %v804_v8 = vsub.f32 %v796_v4, %v803_v7 }
 0xad9   :  { %v805_v10 = vmul.f32 %v804_v8, %v804_v8 }
 0xadb   :  { %v806_v11 = vsel %vm637_vm4, %v805_v10, 0.0 }
 0xadc   :  { %807 = vadd.xlane.f32.xlu1 %v806_v11 }
 0xb65   :  { %v808_v21 = vpop.xlane.xlu1 %807 }
 0xb66   :  { %v809_v22 = vmul.f32 0.020833334, %v808_v21 }
 0xb68   :  { %v810_v23 = vadd.f32 1e-05, %v809_v22 }
 0xb6a   :  { %1374 = vrsqrt.f32 %v810_v23 }
 0xb77   :  { %v1375_v24 = vpop.eup %1374 }
 0xb78   :  { %v812_v26 = vmul.f32 %v1375_v24, %v804_v8 }
 0xb7a   :  { %v817_v28 = vmul.f32 %v1137_v25, %v812_v26 }
 0xb7c   :  { %v822_v29 = vadd.f32 %v1138_v27, %v817_v28 }
 0xb7e   :  { %1327 = vmatmul.mubr.msk.f32.vlgmr.msra.gmra.mxu1 %vm637_vm4, %v822_v29 }
 0xb7f   :  { %1356 = vmatprep.mubr.msk.f32.mxu1 %vm1406_vm0, %v1405_v0  ;;  %1345 = vmatpush3.msra.mxu1 %v1023_v49 }
 0xb80   :  { %1346 = vmatprep.subr.mxu1 %v1405_v0 }
 0xb81   :  { %1347 = vmatpush3.msra.mxu1 %v1022_v50 }
 0xb82   :  { %1348 = vmatprep.subr.mxu1 %v1405_v0 }
 0xb83   :  { %1349 = vmatpush3.msra.mxu1 %v1021_v51 }
 0xb84   :  { %1350 = vmatprep.subr.mxu1 %v1405_v0 }
 0xb85   :  { %1351 = vmatpush3.msra.mxu1 %v1020_v53 }
 0xb86   :  { %1352 = vmatprep.subr.mxu1 %v1405_v0 }
 0xb87   :  { %1353 = vmatpush3.msra.mxu1 %v1019_v54 }
 0xb88   :  { %1354 = vmatprep.subr.mxu1 %v1405_v0 }
 0xb89   :  { %1355 = vmatpush3.msra.mxu1 %v1018_v55 }
 0xc3e   :  { %v903_v34 = vpop.f32.mrf.mxu1 }
 0xc3f   :  { %v904_v35 = vadd.f32 %v1139_v33, %v903_v34 }
 0xc40   :  { %v1328_v36 = vpop.f32.mrf.mxu1 }
 0xc41   :  { %v907_v37 = vmax.f32 %v904_v35, 0.0 }
 0xc43   :  { %1342 = vmatmul.mubr.msk.f32.vlgmr.msra.gmra.mxu0 %vm637_vm4, %v907_v37 }
 0xd03   :  { %v988_v39 = vpop.f32.mrf.mxu0 }
 0xd04   :  { %v989_v40 = vadd.f32 %v1141_v38, %v988_v39 }
 0xd05   :  { %v1343_v41 = vpop.f32.mrf.mxu0 }
 0xd06   :  { %v992_v42 = vadd.f32 %v989_v40, %v822_v29 }
 0xd08   :  { %v995_v43 = vsel %vm637_vm4, %v992_v42, 0.0 }
 0xd09   :  { %996 = vadd.xlane.f32.xlu1 %v995_v43 }
 0xd92   :  { %v997_v44 = vpop.xlane.xlu1 %996 }
 0xd93   :  { %v998_v45 = vmul.f32 0.020833334, %v997_v44 }
 0xd95   :  { %v999_v46 = vsub.f32 %v992_v42, %v998_v45 }
 0xd97   :  { %v1000_v47 = vmul.f32 %v999_v46, %v999_v46 }
 0xd99   :  { %v1001_v48 = vsel %vm637_vm4, %v1000_v47, 0.0 }
 0xd9a   :  { %1002 = vadd.xlane.f32.xlu1 %v1001_v48 }
 0xdab   :  { %1103 = vrot.lane.b32.xlu1 %v1515_v52, %s1410_s1 }
 0xe23   :  { %v1003_v52 = vpop.xlane.xlu1 %1002 }
 0xe24   :  { %v1004_v56 = vmul.f32 0.020833334, %v1003_v52 }
 0xe26   :  { %v1005_v9 = vadd.f32 1e-05, %v1004_v56 }
 0xe27   :  { %v1104_v4 = vpop.permute.xlu1 %1103 }
 0xe28   :  { %1376 = vrsqrt.f32 %v1005_v9 }
 0xe35   :  { %v1377_v57 = vpop.eup %1376 }
 0xe36   :  { %v1007_v59 = vmul.f32 %v1377_v57, %v999_v46 }
 0xe38   :  { %v1012_v61 = vmul.f32 %v1143_v58, %v1007_v59 }
 0xe3a   :  { %v1017_v62 = vadd.f32 %v1144_v60, %v1012_v61 }
 0xe3c   :  { %1357 = vmatmul.mubr.msk.f32.vlgmr.msra.gmra.mxu1 %vm637_vm4, %v1017_v62 }
 0xefc   :  { %v1098_v1 = vpop.f32.mrf.mxu1 }
 0xefd   :  { %v1099_v2 = vadd.f32 %v1145_v63, %v1098_v1 }
 0xefe   :  { %v1358_v3 = vpop.f32.mrf.mxu1 }
 0xeff   :  { %1378 = vtanh.f32 %v1099_v2 }
 0xf0c   :  { %v1379_v0 = vpop.eup %1378 }
 0xf0d   :  { %v1106_v5 = vsel %vm160_vm3, %v1379_v0, %v1104_v4 }
 0xf0e   :  { %v1108_v6 = vsel %vm1107_vm5, %v1106_v5, 0.0 }
 0xf0f   :  { %1109 = vst [vmem:[%s1565_s4] sm:$0xff] %v1108_v6 }
 0xf10   :  { %1114 = vsyncpa [#allocation3], 1 }

</bundles_post_ra>
